<compile_context>
chip_gen: v5e
topology: v5e:2x2
jax: 0.10.0
libtpu: 0.0.40
codegen_flags: <defaults>
</compile_context>

<pallas_src>
import functools

import jax
import jax.numpy as jnp
from jax.experimental import pallas as pl
from jax.experimental.pallas import tpu as pltpu


_NEG_FILL = -1e30  # sigmoid(_NEG_FILL) == 0 exactly -> padded logits contribute 0


def _gen_config():
    """(num_groups, input-block budget bytes, vmem_limit bytes) for this TPU."""
    kind = ""
    try:
        kind = jax.devices()[0].device_kind.lower()
    except Exception:
        pass
    if "v7" in kind:                          # 2 TensorCores, 64 MiB VMEM per TC
        return 2, 40 * 2**20, 56 * 2**20
    if "v5" in kind or "v6" in kind:          # 1 TC, 128 MiB VMEM
        return 1, 88 * 2**20, 104 * 2**20
    return 1, 40 * 2**20, 56 * 2**20          # unknown chip: conservative


def _pick_tile_s(S, R, x_item, t_item, budget_bytes):
    """Largest middle-axis tile (in 128-lane units) with 2x-buffered blocks in budget."""
    per_unit = 2 * R * 128 * (x_item + t_item)      # both inputs x 2 pipeline buffers
    ts = max(8, int(budget_bytes // per_unit))
    if ts >= S:
        return int(S)                               # one full-extent block
    return max(8, (ts // 32) * 32)                  # keep (8/16/32,128) packing exact


def _edice_kernel(x_ref, t_ref, out_ref, acc_i_ref, acc_s2_ref, acc_t2_ref, *,
                  s_total, tile_s, exact_cover):
    """One grid step = one (group, spatial-tile).

    x_ref, t_ref : (R, tile_s, 128) logits / targets (R = N*C rows)
    out_ref      : (3, R, 128) per-group lane partials [s*t, s*s, t*t]
    acc_*_ref    : (R, 128) f32 lane-dense accumulators (reset at first tile).
    """
    j = pl.program_id(1)
    nj = pl.num_programs(1)

    @pl.when(j == 0)
    def _init():
        acc_i_ref[...] = jnp.zeros_like(acc_i_ref)
        acc_s2_ref[...] = jnp.zeros_like(acc_s2_ref)
        acc_t2_ref[...] = jnp.zeros_like(acc_t2_ref)

    def _accumulate(valid):
        x = x_ref[...].astype(jnp.float32)
        t = t_ref[...].astype(jnp.float32)
        s = jax.nn.sigmoid(x)
        if valid is not None:
            s = jnp.where(valid, s, 0.0)
            t = jnp.where(valid, t, 0.0)
        # Element-wise lane accumulation; cross-lane reduce is deferred to JAX.
        acc_i_ref[...] += jnp.sum(s * t, axis=1)
        acc_s2_ref[...] += jnp.sum(s * s, axis=1)
        acc_t2_ref[...] += jnp.sum(t * t, axis=1)

    if exact_cover:
        _accumulate(None)                       # hot path only, no masking code
    else:
        base = (pl.program_id(0) * nj + j) * tile_s   # middle-axis start of this tile

        @pl.when(base + tile_s <= s_total)
        def _steady():                          # full tile: mask-free body
            _accumulate(None)

        @pl.when(base + tile_s > s_total)
        def _boundary():
            # Partial last real tile, or a clamped duplicate tile (base >= s_total
            # -> mask all-False).  Only these tiles pay for iota + where.
            sub = jax.lax.broadcasted_iota(jnp.int32, x_ref.shape, 1)
            _accumulate((base + sub) < s_total)

    @pl.when(j == nj - 1)
    def _finalize():
        out_ref[0, :, :] = acc_i_ref[...]
        out_ref[1, :, :] = acc_s2_ref[...]
        out_ref[2, :, :] = acc_t2_ref[...]


def edice_loss(inputs, target, do_sigmoid=True, *, tile_s=None, num_groups=None,
               smooth=1.0):
    """EDiceLoss.forward.  inputs/target: (N, C, H, W), any float-ish dtypes."""
    assert do_sigmoid, "only the default do_sigmoid=True path is implemented"
    N, C, H, W = inputs.shape
    M = H * W
    R = N * C

    groups_default, budget, vmem_cap = _gen_config()
    if num_groups is None:
        num_groups = groups_default

    # Free reshapes only -- no transpose, no dtype widening before the kernel.
    x = inputs.reshape(R, M)
    t = target.reshape(R, M)

    # View the spatial axis as (S, 128) so every vreg is fully packed.  Real
    # BraTS slices (e.g. 240x240) are already 128-multiples; otherwise pad the
    # lane tail once with values that contribute exactly zero.
    Mp = ((M + 127) // 128) * 128
    if Mp != M:
        x = jnp.pad(x, ((0, 0), (0, Mp - M)), constant_values=_NEG_FILL)
        t = jnp.pad(t, ((0, 0), (0, Mp - M)), constant_values=0)
    S = Mp // 128
    x = x.reshape(R, S, 128)
    t = t.reshape(R, S, 128)

    x_item = jnp.dtype(x.dtype).itemsize
    t_item = jnp.dtype(t.dtype).itemsize
    if tile_s is None:
        tile_s = _pick_tile_s(S, R, x_item, t_item, budget)
    tile_s = int(min(int(tile_s), S))

    num_tiles = pl.cdiv(S, tile_s)
    G = max(1, min(int(num_groups), num_tiles))   # parallel spatial groups (v7x: 2 TCs)
    T = pl.cdiv(num_tiles, G)                     # inner (reduction) tiles per group
    exact_cover = (G * T == num_tiles) and (S % tile_s == 0)

    def idx(g, j):
        # Clamp duplicated trailing tiles onto the last real block; they are
        # fully masked to zero inside the kernel's boundary path.
        return (0, jnp.minimum(g * T + j, num_tiles - 1), 0)

    kernel = functools.partial(_edice_kernel, s_total=S, tile_s=tile_s,
                               exact_cover=exact_cover)

    block_bytes = 2 * R * tile_s * 128 * (x_item + t_item)   # 2 pipeline buffers
    vmem_limit = int(min(vmem_cap, max(32 * 2**20, block_bytes + 8 * 2**20)))

    cost = pl.CostEstimate(
        flops=8 * R * Mp,
        transcendentals=R * Mp,
        bytes_accessed=R * Mp * (x_item + t_item) + G * 3 * R * 128 * 4,
    )

    partials = pl.pallas_call(
        kernel,
        out_shape=jax.ShapeDtypeStruct((G, 3, R, 128), jnp.float32),
        grid=(G, T),
        in_specs=[
            pl.BlockSpec((R, tile_s, 128), idx),
            pl.BlockSpec((R, tile_s, 128), idx),
        ],
        out_specs=pl.BlockSpec((None, 3, R, 128), lambda g, j: (g, 0, 0, 0)),
        scratch_shapes=[pltpu.VMEM((R, 128), jnp.float32)] * 3,
        compiler_params=pltpu.CompilerParams(
            dimension_semantics=("parallel", "arbitrary"),
            vmem_limit_bytes=vmem_limit,
        ),
        cost_estimate=cost,
    )(x, t)

    # Tiny finalization in plain JAX: lanes + groups + batch, then per-channel dice.
    sums = jnp.sum(partials, axis=(0, 3)).reshape(3, N, C).sum(axis=1)   # (3, C)
    inter, s_sq, t_sq = sums[0], sums[1], sums[2]
    dice = (2.0 * inter + smooth) / (s_sq + t_sq + smooth)
    return jnp.mean(1.0 - dice)


def edice_loss_ref(inputs, target):
    """Pure-JAX reference matching the PyTorch forward."""
    smooth = 1.0
    C = target.shape[1]
    total = 0.0
    for i in range(C):
        s = jax.nn.sigmoid(inputs[:, i, ...].astype(jnp.float32))
        t = target[:, i, ...].astype(jnp.float32)
        inter = jnp.sum(s * t)
        dice = (2 * inter + smooth) / (jnp.sum(s * s) + jnp.sum(t * t) + smooth)
        total = total + (1.0 - dice)
    return total / C


if __name__ == "__main__":
    key = jax.random.PRNGKey(0)

    # ---- Test 1: simple 128-multiple spatial size, auto config -------------
    N, C, H, W = 2, 3, 16, 16
    k1, k2, key = jax.random.split(key, 3)
    x1 = jax.random.normal(k1, (N, C, H, W), dtype=jnp.float32)            # logits
    t1 = jax.random.bernoulli(k2, 0.3, (N, C, H, W)).astype(jnp.bfloat16)  # binary masks
    ref1 = jax.block_until_ready(edice_loss_ref(x1, t1))
    out1 = jax.block_until_ready(edice_loss(x1, t1))
    assert jnp.allclose(out1, ref1, rtol=1e-5, atol=1e-5), (out1, ref1)

    # ---- Test 2: multi-tile grid with a partial last tile AND a clamped
    #      duplicate tile (S=20, tile_s=8, 2 groups) --------------------------
    N, C, H, W = 2, 3, 40, 64
    k1, k2, key = jax.random.split(key, 3)
    x2 = jax.random.normal(k1, (N, C, H, W), dtype=jnp.float32)
    t2 = jax.random.bernoulli(k2, 0.3, (N, C, H, W)).astype(jnp.bfloat16)
    ref2 = jax.block_until_ready(edice_loss_ref(x2, t2))
    out2 = jax.block_until_ready(edice_loss(x2, t2, tile_s=8, num_groups=2))
    assert jnp.allclose(out2, ref2, rtol=1e-5, atol=1e-5), (out2, ref2)

    # ---- Test 3: spatial size not a multiple of 128 (lane-pad path) --------
    N, C, H, W = 2, 3, 18, 18
    k1, k2, key = jax.random.split(key, 3)
    x3 = jax.random.normal(k1, (N, C, H, W), dtype=jnp.float32)
    t3 = jax.random.bernoulli(k2, 0.3, (N, C, H, W)).astype(jnp.bfloat16)
    ref3 = jax.block_until_ready(edice_loss_ref(x3, t3))
    out3 = jax.block_until_ready(edice_loss(x3, t3))
    assert jnp.allclose(out3, ref3, rtol=1e-5, atol=1e-5), (out3, ref3)

    print("KERNEL_OK")
</pallas_src>

<mosaic_0001>
module attributes {stable_mosaic.version = 11 : i64} {
  func.func @_edice_kernel(%arg0: i32, %arg1: i32, %arg2: memref<6x2x128xf32, #tpu.memory_space<vmem>>, %arg3: memref<6x2x128xbf16, #tpu.memory_space<vmem>>, %arg4: memref<1x3x6x128xf32, #tpu.memory_space<vmem>>, %arg5: memref<6x128xf32, #tpu.memory_space<vmem>>, %arg6: memref<6x128xf32, #tpu.memory_space<vmem>>, %arg7: memref<6x128xf32, #tpu.memory_space<vmem>>) attributes {dimension_semantics = [#tpu.dimension_semantics<parallel>, #tpu.dimension_semantics<arbitrary>], iteration_bounds = array<i64: 1, 1>, scalar_prefetch = 0 : i64, scratch_operands = 3 : i64, tpu.core_type = #tpu.core_type<tc>, window_params = [{transform_indices = @transform_0, window_bounds = array<i64: 6, 2, 128>}, {transform_indices = @transform_1, window_bounds = array<i64: 6, 2, 128>}, {transform_indices = @transform_2, window_bounds = array<i64: 1, 3, 6, 128>}]} {
    %c0_i32 = arith.constant 0 : i32
    %0 = arith.cmpi eq, %arg1, %c0_i32 : i32
    %1 = arith.extui %0 : i1 to i32
    %c0_i32_0 = arith.constant 0 : i32
    %2 = arith.cmpi ne, %1, %c0_i32_0 : i32
    scf.if %2 {
      %cst_23 = arith.constant 0.000000e+00 : f32
      %29 = vector.broadcast %cst_23 : f32 to vector<6x128xf32>
      %c0_24 = arith.constant 0 : index
      %c0_25 = arith.constant 0 : index
      %30 = vector.load %arg5[%c0_24, %c0_25] : memref<6x128xf32, #tpu.memory_space<vmem>>, vector<6x128xf32>
      tpu.vector_store %arg5[%c0_24, %c0_25], %29 {strides = array<i32>} : memref<6x128xf32, #tpu.memory_space<vmem>>, vector<6x128xf32>,
      %cst_26 = arith.constant 0.000000e+00 : f32
      %31 = vector.broadcast %cst_26 : f32 to vector<6x128xf32>
      %c0_27 = arith.constant 0 : index
      %c0_28 = arith.constant 0 : index
      %32 = vector.load %arg6[%c0_27, %c0_28] : memref<6x128xf32, #tpu.memory_space<vmem>>, vector<6x128xf32>
      tpu.vector_store %arg6[%c0_27, %c0_28], %31 {strides = array<i32>} : memref<6x128xf32, #tpu.memory_space<vmem>>, vector<6x128xf32>,
      %cst_29 = arith.constant 0.000000e+00 : f32
      %33 = vector.broadcast %cst_29 : f32 to vector<6x128xf32>
      %c0_30 = arith.constant 0 : index
      %c0_31 = arith.constant 0 : index
      %34 = vector.load %arg7[%c0_30, %c0_31] : memref<6x128xf32, #tpu.memory_space<vmem>>, vector<6x128xf32>
      tpu.vector_store %arg7[%c0_30, %c0_31], %33 {strides = array<i32>} : memref<6x128xf32, #tpu.memory_space<vmem>>, vector<6x128xf32>,
    } else {
    }
    %c0 = arith.constant 0 : index
    %c0_1 = arith.constant 0 : index
    %c0_2 = arith.constant 0 : index
    %3 = vector.load %arg2[%c0, %c0_1, %c0_2] : memref<6x2x128xf32, #tpu.memory_space<vmem>>, vector<6x2x128xf32>
    %c0_3 = arith.constant 0 : index
    %c0_4 = arith.constant 0 : index
    %c0_5 = arith.constant 0 : index
    %4 = vector.load %arg3[%c0_3, %c0_4, %c0_5] : memref<6x2x128xbf16, #tpu.memory_space<vmem>>, vector<6x2x128xbf16>
    %5 = arith.extf %4 : vector<6x2x128xbf16> to vector<6x2x128xf32>
    %6 = arith.negf %3 : vector<6x2x128xf32>
    %7 = math.exp %6 : vector<6x2x128xf32>
    %cst = arith.constant 1.000000e+00 : f32
    %8 = vector.broadcast %cst : f32 to vector<6x2x128xf32>
    %9 = arith.addf %8, %7 : vector<6x2x128xf32>
    %10 = arith.divf %8, %9 : vector<6x2x128xf32>
    %c0_6 = arith.constant 0 : index
    %c0_7 = arith.constant 0 : index
    %11 = vector.load %arg5[%c0_6, %c0_7] : memref<6x128xf32, #tpu.memory_space<vmem>>, vector<6x128xf32>
    %12 = arith.mulf %10, %5 : vector<6x2x128xf32>
    %cst_8 = arith.constant dense<0.000000e+00> : vector<6x128xf32>
    %13 = vector.multi_reduction <add>, %12, %cst_8 [1] : vector<6x2x128xf32> to vector<6x128xf32>
    %14 = arith.addf %11, %13 : vector<6x128xf32>
    %c0_9 = arith.constant 0 : index
    %c0_10 = arith.constant 0 : index
    %15 = vector.load %arg5[%c0_9, %c0_10] : memref<6x128xf32, #tpu.memory_space<vmem>>, vector<6x128xf32>
    tpu.vector_store %arg5[%c0_9, %c0_10], %14 {strides = array<i32>} : memref<6x128xf32, #tpu.memory_space<vmem>>, vector<6x128xf32>,
    %c0_11 = arith.constant 0 : index
    %c0_12 = arith.constant 0 : index
    %16 = vector.load %arg6[%c0_11, %c0_12] : memref<6x128xf32, #tpu.memory_space<vmem>>, vector<6x128xf32>
    %17 = arith.mulf %10, %10 : vector<6x2x128xf32>
    %cst_13 = arith.constant dense<0.000000e+00> : vector<6x128xf32>
    %18 = vector.multi_reduction <add>, %17, %cst_13 [1] : vector<6x2x128xf32> to vector<6x128xf32>
    %19 = arith.addf %16, %18 : vector<6x128xf32>
    %c0_14 = arith.constant 0 : index
    %c0_15 = arith.constant 0 : index
    %20 = vector.load %arg6[%c0_14, %c0_15] : memref<6x128xf32, #tpu.memory_space<vmem>>, vector<6x128xf32>
    tpu.vector_store %arg6[%c0_14, %c0_15], %19 {strides = array<i32>} : memref<6x128xf32, #tpu.memory_space<vmem>>, vector<6x128xf32>,
    %c0_16 = arith.constant 0 : index
    %c0_17 = arith.constant 0 : index
    %21 = vector.load %arg7[%c0_16, %c0_17] : memref<6x128xf32, #tpu.memory_space<vmem>>, vector<6x128xf32>
    %22 = arith.mulf %5, %5 : vector<6x2x128xf32>
    %cst_18 = arith.constant dense<0.000000e+00> : vector<6x128xf32>
    %23 = vector.multi_reduction <add>, %22, %cst_18 [1] : vector<6x2x128xf32> to vector<6x128xf32>
    %24 = arith.addf %21, %23 : vector<6x128xf32>
    %c0_19 = arith.constant 0 : index
    %c0_20 = arith.constant 0 : index
    %25 = vector.load %arg7[%c0_19, %c0_20] : memref<6x128xf32, #tpu.memory_space<vmem>>, vector<6x128xf32>
    tpu.vector_store %arg7[%c0_19, %c0_20], %24 {strides = array<i32>} : memref<6x128xf32, #tpu.memory_space<vmem>>, vector<6x128xf32>,
    %c0_i32_21 = arith.constant 0 : i32
    %26 = arith.cmpi eq, %arg1, %c0_i32_21 : i32
    %27 = arith.extui %26 : i1 to i32
    %c0_i32_22 = arith.constant 0 : i32
    %28 = arith.cmpi ne, %27, %c0_i32_22 : i32
    scf.if %28 {
      %c0_23 = arith.constant 0 : index
      %c0_24 = arith.constant 0 : index
      %29 = vector.load %arg5[%c0_23, %c0_24] : memref<6x128xf32, #tpu.memory_space<vmem>>, vector<6x128xf32>
      %c0_25 = arith.constant 0 : index
      %c0_26 = arith.constant 0 : index
      %c0_27 = arith.constant 0 : index
      %c0_28 = arith.constant 0 : index
      %30 = vector.load %arg4[%c0_25, %c0_26, %c0_27, %c0_28] : memref<1x3x6x128xf32, #tpu.memory_space<vmem>>, vector<1x1x6x128xf32>
      %31 = vector.shape_cast %30 : vector<1x1x6x128xf32> to vector<6x128xf32>
      %32 = vector.shape_cast %29 : vector<6x128xf32> to vector<1x1x6x128xf32>
      tpu.vector_store %arg4[%c0_25, %c0_26, %c0_27, %c0_28], %32 {strides = array<i32>} : memref<1x3x6x128xf32, #tpu.memory_space<vmem>>, vector<1x1x6x128xf32>,
      %c0_29 = arith.constant 0 : index
      %c0_30 = arith.constant 0 : index
      %33 = vector.load %arg6[%c0_29, %c0_30] : memref<6x128xf32, #tpu.memory_space<vmem>>, vector<6x128xf32>
      %c0_31 = arith.constant 0 : index
      %c1 = arith.constant 1 : index
      %c0_32 = arith.constant 0 : index
      %c0_33 = arith.constant 0 : index
      %34 = vector.load %arg4[%c0_31, %c1, %c0_32, %c0_33] : memref<1x3x6x128xf32, #tpu.memory_space<vmem>>, vector<1x1x6x128xf32>
      %35 = vector.shape_cast %34 : vector<1x1x6x128xf32> to vector<6x128xf32>
      %36 = vector.shape_cast %33 : vector<6x128xf32> to vector<1x1x6x128xf32>
      tpu.vector_store %arg4[%c0_31, %c1, %c0_32, %c0_33], %36 {strides = array<i32>} : memref<1x3x6x128xf32, #tpu.memory_space<vmem>>, vector<1x1x6x128xf32>,
      %c0_34 = arith.constant 0 : index
      %c0_35 = arith.constant 0 : index
      %37 = vector.load %arg7[%c0_34, %c0_35] : memref<6x128xf32, #tpu.memory_space<vmem>>, vector<6x128xf32>
      %c0_36 = arith.constant 0 : index
      %c2 = arith.constant 2 : index
      %c0_37 = arith.constant 0 : index
      %c0_38 = arith.constant 0 : index
      %38 = vector.load %arg4[%c0_36, %c2, %c0_37, %c0_38] : memref<1x3x6x128xf32, #tpu.memory_space<vmem>>, vector<1x1x6x128xf32>
      %39 = vector.shape_cast %38 : vector<1x1x6x128xf32> to vector<6x128xf32>
      %40 = vector.shape_cast %37 : vector<6x128xf32> to vector<1x1x6x128xf32>
      tpu.vector_store %arg4[%c0_36, %c2, %c0_37, %c0_38], %40 {strides = array<i32>} : memref<1x3x6x128xf32, #tpu.memory_space<vmem>>, vector<1x1x6x128xf32>,
    } else {
    }
    return
  }
  func.func @transform_0(%arg0: i32, %arg1: i32) -> (i32, i32, i32) {
    %c1_i32 = arith.constant 1 : i32
    %0 = arith.muli %arg0, %c1_i32 : i32
    %1 = arith.addi %0, %arg1 : i32
    %c0_i32 = arith.constant 0 : i32
    %2 = arith.minsi %1, %c0_i32 : i32
    %c0_i32_0 = arith.constant 0 : i32
    %c0_i32_1 = arith.constant 0 : i32
    %c0_i32_2 = arith.constant 0 : i32
    return %c0_i32_0, %2, %c0_i32_1 : i32, i32, i32
  }
  func.func @transform_1(%arg0: i32, %arg1: i32) -> (i32, i32, i32) {
    %c1_i32 = arith.constant 1 : i32
    %0 = arith.muli %arg0, %c1_i32 : i32
    %1 = arith.addi %0, %arg1 : i32
    %c0_i32 = arith.constant 0 : i32
    %2 = arith.minsi %1, %c0_i32 : i32
    %c0_i32_0 = arith.constant 0 : i32
    %c0_i32_1 = arith.constant 0 : i32
    %c0_i32_2 = arith.constant 0 : i32
    return %c0_i32_0, %2, %c0_i32_1 : i32, i32, i32
  }
  func.func @transform_2(%arg0: i32, %arg1: i32) -> (i32, i32, i32, i32) {
    %c0_i32 = arith.constant 0 : i32
    %c0_i32_0 = arith.constant 0 : i32
    %c0_i32_1 = arith.constant 0 : i32
    %c0_i32_2 = arith.constant 0 : i32
    return %arg0, %c0_i32, %c0_i32_0, %c0_i32_1 : i32, i32, i32, i32
  }
}

</mosaic_0001>

<bundles_post_ra>
// kernel: tpu_custom_call.1
= control target key start
LH: loop header
LB: loop body
LE: loop exit
PB: predicated region body
PF: predicated region fallthrough
CT: control target
= control target key end

     0   :  { %7 = vsyncpa [#allocation6], 0  ;;  %s732_s0 = inlined_call_operand.hbm [shape: f32[6,2,128], index: 0, kind: input, shape index: {}]   ;;  %s733_s1 = inlined_call_operand.hbm [shape: bf16[6,2,128], index: 1, kind: input, shape index: {}]   ;;  %s734_s2 = inlined_call_operand.vmem [shape: f32[1,3,6,128], index: 2, kind: output, shape index: {}]  }
   0x1   :  { %s18_s11 = sshll.u32 %s732_s0, 4  ;;  %s19_s11 = int_to_ptr.hbm [resolvable:$true] %s18_s11 }
   0x2   :  { %8 = vsyncpa [#allocation8], 0  ;;  %s503_s12 = smov [#allocation5]   ;;  %s35_s16 = sshll.u32 %s733_s1, 4  ;;  %s36_s16 = int_to_ptr.hbm [resolvable:$true] %s35_s16 }
   0x3   :  { %s20_s13 = sshll.u32 %s503_s12, 4  ;;  %s504_s17 = smov 32   ;;  %s21_s13 = int_to_ptr.vmem [resolvable:$true] %s20_s13 }
   0x4   :  { %s505_s18 = smov 2   ;;  %s506_s19 = smov [#allocation7]  }
   0x5   :  { %26 = dma.hbm_to_vmem [thread:$0]  %s19_s11, 192, %s21_s13, [#allocation6], %s504_s17, %s504_s17, %s505_s18  }
   0x6   :  { %s37_s20 = sshll.u32 %s506_s19, 4  ;;  %s507_s21 = smov 16   ;;  %s38_s20 = int_to_ptr.vmem [resolvable:$true] %s37_s20 }
   0x7   :  { %s508_s22 = smov 1  }
   0x8   :  { %43 = dma.hbm_to_vmem [thread:$0]  %s36_s16, 96, %s38_s20, [#allocation8], %s507_s21, %s507_s21, %s508_s22  }
   0x9   :  { %499 = dma.done.wait [#allocation6], 192  }
   0xa   :  { %500 = vsyncadd [#allocation6], 4294967104 }
   0xb   :  { %501 = dma.done.wait [#allocation8], 96  }
   0xc   :  { %502 = vsyncadd [#allocation8], 4294967200  ;;  %v509_v0 = vmov 0.0   ;;  %v65_v1 = vld [vmem:[#allocation5] sm:$0x3]  ;;  %vm204_vm9 = vcmask 1041408  }
   0xd   :  { %62 = vst [vmem:[#allocation2] sm:$0x3f] %v509_v0  ;;  %v66_v2 = vld [vmem:[#allocation5 + $0x2] sm:$0x3]  ;;  %v67_v3 = vld [vmem:[#allocation5 + $0x4] sm:$0x3] }
   0xe   :  { %63 = vst [vmem:[#allocation3] sm:$0x3f] %v509_v0  ;;  %v68_v4 = vld [vmem:[#allocation5 + $0x6] sm:$0x3]  ;;  %v69_v5 = vld [vmem:[#allocation5 + $0x8] sm:$0x3] }
   0xf   :  { %64 = vst [vmem:[#allocation4] sm:$0x3f] %v509_v0  ;;  %v70_v6 = vld [vmem:[#allocation5 + $0xa] sm:$0x3]  ;;  %v412_v7 = vmul.f32 -1.442695, %v65_v1 }
  0x10   :  { %v413_v8 = vmul.f32 -1.442695, %v66_v2  ;;  %v414_v9 = vmul.f32 -1.442695, %v67_v3  ;;  %v415_v10 = vmul.f32 -1.442695, %v68_v4 }
  0x11   :  { %427 = vpow2.f32 %v412_v7  ;;  %v416_v11 = vmul.f32 -1.442695, %v69_v5  ;;  %v417_v12 = vmul.f32 -1.442695, %v70_v6  ;;  %v71_v14 = vld [vmem:[#allocation7] sm:$0x1] }
  0x12   :  { %429 = vpow2.f32 %v413_v8  ;;  %v72_v15 = vld [vmem:[#allocation7 + $0x1] sm:$0x1]  ;;  %v73_v17 = vld [vmem:[#allocation7 + $0x2] sm:$0x1]  ;;  %v74_v20 = vld [vmem:[#allocation7 + $0x3] sm:$0x1]  ;;  %v535_v25 = vunpack.c.l.bf16 %v71_v14 }
  0x13   :  { %431 = vpow2.f32 %v414_v9  ;;  %v75_v21 = vld [vmem:[#allocation7 + $0x4] sm:$0x1]  ;;  %v76_v24 = vld [vmem:[#allocation7 + $0x5] sm:$0x1]  ;;  %v537_v26 = vunpack.c.l.bf16 %v72_v15  ;;  %v547_v33 = vunpack.c.l.bf16 %v73_v17  ;;  %v549_v34 = vunpack.c.l.bf16 %v74_v20 }
  0x14   :  { %433 = vpow2.f32 %v415_v10  ;;  %v551_v35 = vunpack.c.l.bf16 %v75_v21  ;;  %v555_v37 = vunpack.c.l.bf16 %v76_v24 }
  0x15   :  { %435 = vpow2.f32 %v416_v11 }
  0x16   :  { %437 = vpow2.f32 %v417_v12 }
  0x17   :  { %v428_v13 = vpop.eup %427 }
  0x18   :  { %v430_v16 = vpop.eup %429  ;;  %v531_v18 = vadd.f32 1.0, %v428_v13 }
  0x19   :  { %v432_v19 = vpop.eup %431  ;;  %v533_v22 = vadd.f32 1.0, %v430_v16 }
  0x1a   :  { %v434_v23 = vpop.eup %433  ;;  %v539_v27 = vadd.f32 1.0, %v432_v19  ;;  %439 = vrcp.f32 %v531_v18  ;;  %v116_v30 = vand.u32 2147483647, %v531_v18  ;;  %v118_v31 = vand.u32 2147483648, %v531_v18 }
  0x1b   :  { %v436_v28 = vpop.eup %435  ;;  %v542_v29 = vadd.f32 1.0, %v434_v23  ;;  %441 = vrcp.f32 %v533_v22  ;;  %v131_v38 = vand.u32 2147483647, %v533_v22  ;;  %v133_v39 = vand.u32 2147483648, %v533_v22 }
  0x1c   :  { %v438_v32 = vpop.eup %437  ;;  %v553_v36 = vadd.f32 1.0, %v436_v28  ;;  %443 = vrcp.f32 %v539_v27  ;;  %vm112_vm0 = vweird.f32 %v531_v18  ;;  %vm127_vm1 = vweird.f32 %v533_v22 }
  0x1d   :  { %v146_v40 = vand.u32 2147483647, %v539_v27  ;;  %v148_v41 = vand.u32 2147483648, %v539_v27  ;;  %v564_v42 = vadd.f32 1.0, %v438_v32  ;;  %vm566_vm2 = vcmp.eq.f32.partialorder %v116_v30, 8.507059e+37 }
  0x1e   :  { %v119_v44 = vor.u32 1.1754944e-38, %v118_v31  ;;  %445 = vrcp.f32 %v542_v29  ;;  %vm142_vm3 = vweird.f32 %v539_v27  ;;  %v161_v46 = vand.u32 2147483647, %v542_v29 }
  0x1f   :  { %v163_v47 = vand.u32 2147483648, %v542_v29  ;;  %447 = vrcp.f32 %v553_v36  ;;  %vm576_vm4 = vcmp.eq.f32.partialorder %v131_v38, 8.507059e+37  ;;  %v134_v51 = vor.u32 1.1754944e-38, %v133_v39 }
  0x20   :  { %v440_v45 = vpop.eup %439  ;;  %vm157_vm5 = vweird.f32 %v542_v29  ;;  %vm582_vm6 = vcmp.eq.f32.partialorder %v146_v40, 8.507059e+37  ;;  %v149_v54 = vor.u32 1.1754944e-38, %v148_v41  ;;  %vm172_vm7 = vweird.f32 %v553_v36 }
  0x21   :  { %v442_v48 = vpop.eup %441  ;;  %v108_v49 = vmul.f32 %v440_v45, %v531_v18  ;;  %v176_v55 = vand.u32 2147483647, %v553_v36  ;;  %vm113_vm8 = vweird.f32 %v440_v45  ;;  %v178_v58 = vand.u32 2147483648, %v553_v36 }
  0x22   :  { %v123_v52 = vmul.f32 %v442_v48, %v533_v22  ;;  %v444_v56 = vpop.eup %443  ;;  %449 = vrcp.f32 %v564_v42  ;;  %vm128_vm10 = vweird.f32 %v442_v48  ;;  %vm591_vm11 = vcmp.eq.f32.partialorder %v161_v46, 8.507059e+37  ;;  %vm600_vm14 = vmor %vm112_vm0, %vm113_vm8 }
  0x23   :  { %v109_v57 = vsub.f32 1.0, %v108_v49  ;;  %v138_v60 = vmul.f32 %v444_v56, %v539_v27  ;;  %v164_v62 = vor.u32 1.1754944e-38, %v163_v47  ;;  %vm143_vm12 = vweird.f32 %v444_v56  ;;  %vm612_vm13 = vmor %vm127_vm1, %vm128_vm10 }
  0x24   :  { %v124_v59 = vsub.f32 1.0, %v123_v52  ;;  %v446_v63 = vpop.eup %445  ;;  %v191_v1 = vand.u32 2147483647, %v564_v42  ;;  %vm605_vm15 = vcmp.eq.f32.partialorder %v176_v55, 8.507059e+37  ;;  %v179_v11 = vor.u32 1.1754944e-38, %v178_v58  ;;  %vm623_vm1 = vmor %vm142_vm3, %vm143_vm12 }
  0x25   :  { %v110_v0 = vmul.f32 %v440_v45, %v109_v57  ;;  %v448_v2 = vpop.eup %447  ;;  %v139_v5 = vsub.f32 1.0, %v138_v60  ;;  %v153_v6 = vmul.f32 %v446_v63, %v542_v29  ;;  %v193_v12 = vand.u32 2147483648, %v564_v42 }
  0x26   :  { %v125_v4 = vmul.f32 %v442_v48, %v124_v59  ;;  %v168_v10 = vmul.f32 %v448_v2, %v553_v36  ;;  %vm158_vm0 = vweird.f32 %v446_v63  ;;  %vm173_vm8 = vweird.f32 %v448_v2 }
  0x27   :  { %v111_v8 = vadd.f32 %v440_v45, %v110_v0  ;;  %v140_v14 = vmul.f32 %v444_v56, %v139_v5  ;;  %v154_v15 = vsub.f32 1.0, %v153_v6  ;;  %vm627_vm10 = vcmp.eq.f32.partialorder %v191_v1, 8.507059e+37  ;;  %vm639_vm3 = vmor %vm157_vm5, %vm158_vm0 }
  0x28   :  { %v126_v13 = vadd.f32 %v442_v48, %v125_v4  ;;  %v450_v16 = vpop.eup %449  ;;  %v169_v19 = vsub.f32 1.0, %v168_v10  ;;  %v194_v32 = vor.u32 1.1754944e-38, %v193_v12  ;;  %vm757_vm5 = vweird.f32 %v564_v42 }
  0x29   :  { %v115_v17 = vsel %vm600_vm14, %v440_v45, %v111_v8  ;;  %v141_v23 = vadd.f32 %v444_v56, %v140_v14  ;;  %v155_v24 = vmul.f32 %v446_v63, %v154_v15  ;;  %v183_v31 = vmul.f32 %v450_v16, %v564_v42 }
  0x2a   :  { %v120_v21 = vsel %vm566_vm2, %v119_v44, %v115_v17  ;;  %v130_v22 = vsel %vm612_vm13, %v442_v48, %v126_v13  ;;  %v170_v30 = vmul.f32 %v448_v2, %v169_v19  ;;  %vm648_vm2 = vmor %vm172_vm7, %vm173_vm8  ;;  %vm253_vm7 = vcmask 1041409  }
  0x2b   :  { %v135_v27 = vsel %vm576_vm4, %v134_v51, %v130_v22  ;;  %v145_v38 = vsel %vm623_vm1, %v444_v56, %v141_v23  ;;  %v156_v39 = vadd.f32 %v446_v63, %v155_v24  ;;  %v198_v29 = vmul.f32 %v120_v21, %v535_v25 }
  0x2c   :  { %v199_v41 = vmul.f32 %v135_v27, %v537_v26  ;;  %v150_v43 = vsel %vm582_vm6, %v149_v54, %v145_v38  ;;  %v171_v44 = vadd.f32 %v448_v2, %v170_v30  ;;  %v184_v45 = vsub.f32 1.0, %v183_v31 }
  0x2d   :  { %vm188_vm4 = vweird.f32 %v450_v16  ;;  %v160_v46 = vsel %vm639_vm3, %v446_v63, %v156_v39  ;;  %v200_v47 = vmul.f32 %v150_v43, %v547_v33  ;;  %v205_v36 = vsel %vm204_vm9, %v198_v29, 0.0 }
  0x2e   :  { %v212_v48 = vsel %vm204_vm9, %v199_v41, 0.0  ;;  %v165_v49 = vsel %vm591_vm11, %v164_v62, %v160_v46  ;;  %v175_v50 = vsel %vm648_vm2, %v448_v2, %v171_v44  ;;  %v185_v51 = vmul.f32 %v450_v16, %v184_v45  ;;  %vm669_vm6 = vmor %vm757_vm5, %vm188_vm4 }
  0x2f   :  { %v206_v52 = vrot.slane %v205_v36, 4  ;;  %v180_v53 = vsel %vm605_vm15, %v179_v11, %v175_v50  ;;  %v201_v55 = vmul.f32 %v165_v49, %v549_v34  ;;  %v213_v56 = vrot.slane %v212_v48, 4 }
  0x30   :  { %v219_v57 = vsel %vm204_vm9, %v200_v47, 0.0  ;;  %v186_v58 = vadd.f32 %v450_v16, %v185_v51  ;;  %v202_v59 = vmul.f32 %v180_v53, %v551_v35  ;;  %vm255_vm11 = vcmask 1042434  }
  0x31   :  { %v207_v60 = vadd.f32 %v206_v52, %v205_v36  ;;  %v220_v61 = vrot.slane %v219_v57, 4  ;;  %v214_v62 = vadd.f32 %v213_v56, %v212_v48  ;;  %v226_v63 = vsel %vm204_vm9, %v201_v55, 0.0 }
  0x32   :  { %v267_v42 = vmul.f32 %v120_v21, %v120_v21  ;;  %v190_v0 = vsel %vm669_vm6, %v450_v16, %v186_v58  ;;  %v227_v3 = vrot.slane %v226_v63, 4  ;;  %v233_v6 = vsel %vm204_vm9, %v202_v59, 0.0 }
  0x33   :  { %v208_v1 = vrot.slane %v207_v60, 2  ;;  %v221_v2 = vadd.f32 %v220_v61, %v219_v57  ;;  %v195_v4 = vsel %vm627_vm10, %v194_v32, %v190_v0  ;;  %v215_v5 = vrot.slane %v214_v62, 2 }
  0x34   :  { %vm257_vm12 = vcmask 1043459   ;;  %v268_v7 = vmul.f32 %v135_v27, %v135_v27  ;;  %v203_v8 = vmul.f32 %v195_v4, %v555_v37  ;;  %v228_v11 = vadd.f32 %v227_v3, %v226_v63 }
  0x35   :  { %v209_v9 = vadd.f32 %v208_v1, %v207_v60  ;;  %v222_v10 = vrot.slane %v221_v2, 2  ;;  %v216_v12 = vadd.f32 %v215_v5, %v214_v62  ;;  %v234_v13 = vrot.slane %v233_v6, 4 }
  0x36   :  { %v269_v14 = vmul.f32 %v150_v43, %v150_v43  ;;  %v270_v15 = vmul.f32 %v165_v49, %v165_v49  ;;  %v229_v18 = vrot.slane %v228_v11, 2  ;;  %v240_v19 = vsel %vm204_vm9, %v203_v8, 0.0 }
  0x37   :  { %v210_v16 = vrot.slane %v209_v9, 1  ;;  %v223_v17 = vadd.f32 %v222_v10, %v221_v2  ;;  %vm259_vm13 = vcmask 1044484   ;;  %v217_v20 = vrot.slane %v216_v12, 1  ;;  %v197_v2 = vld [vmem:[#allocation2] sm:$0x3f] }
  0x38   :  { %v235_v21 = vadd.f32 %v234_v13, %v233_v6  ;;  %v241_v22 = vrot.slane %v240_v19, 4  ;;  %v271_v23 = vmul.f32 %v180_v53, %v180_v53  ;;  %v230_v28 = vadd.f32 %v229_v18, %v228_v11 }
  0x39   :  { %v211_v24 = vadd.f32 %v210_v16, %v209_v9  ;;  %v224_v27 = vrot.slane %v223_v17, 1  ;;  %vm261_vm14 = vcmask 1045509   ;;  %v272_v30 = vmul.f32 %v195_v4, %v195_v4 }
  0x3a   :  { %v218_v31 = vadd.f32 %v217_v20, %v216_v12  ;;  %v236_v32 = vrot.slane %v235_v21, 2  ;;  %v242_v38 = vadd.f32 %v241_v22, %v240_v19  ;;  %v273_v39 = vsel %vm204_vm9, %v267_v42, 0.0 }
  0x3b   :  { %v225_v40 = vadd.f32 %v224_v27, %v223_v17  ;;  %v231_v29 = vrot.slane %v230_v28, 1  ;;  %v274_v41 = vrot.slane %v273_v39, 4  ;;  %v280_v43 = vsel %vm204_vm9, %v268_v7, 0.0 }
  0x3c   :  { %v237_v44 = vadd.f32 %v236_v32, %v235_v21  ;;  %v243_v45 = vrot.slane %v242_v38, 2  ;;  %v254_v46 = vsel %vm253_vm7, %v218_v31, %v211_v24  ;;  %v281_v47 = vrot.slane %v280_v43, 4 }
  0x3d   :  { %v232_v36 = vadd.f32 %v231_v29, %v230_v28  ;;  %v256_v48 = vsel %vm255_vm11, %v225_v40, %v254_v46  ;;  %v275_v49 = vadd.f32 %v274_v41, %v273_v39  ;;  %v287_v50 = vsel %vm204_vm9, %v269_v14, 0.0 }
  0x3e   :  { %v238_v51 = vrot.slane %v237_v44, 1  ;;  %v244_v52 = vadd.f32 %v243_v45, %v242_v38  ;;  %v282_v53 = vadd.f32 %v281_v47, %v280_v43  ;;  %v288_v54 = vrot.slane %v287_v50, 4 }
  0x3f   :  { %v258_v55 = vsel %vm257_vm12, %v232_v36, %v256_v48  ;;  %v276_v56 = vrot.slane %v275_v49, 2  ;;  %v294_v57 = vsel %vm204_vm9, %v270_v15, 0.0  ;;  %v301_v58 = vsel %vm204_vm9, %v271_v23, 0.0 }
  0x40   :  { %v239_v59 = vadd.f32 %v238_v51, %v237_v44  ;;  %v245_v60 = vrot.slane %v244_v52, 1  ;;  %v283_v61 = vrot.slane %v282_v53, 2  ;;  %v289_v62 = vadd.f32 %v288_v54, %v287_v50 }
  0x41   :  { %v277_v63 = vadd.f32 %v276_v56, %v275_v49  ;;  %v295_v42 = vrot.slane %v294_v57, 4  ;;  %v302_v0 = vrot.slane %v301_v58, 4  ;;  %v308_v1 = vsel %vm204_vm9, %v272_v30, 0.0 }
  0x42   :  { %v246_v3 = vadd.f32 %v245_v60, %v244_v52  ;;  %v260_v4 = vsel %vm259_vm13, %v239_v59, %v258_v55  ;;  %v284_v5 = vadd.f32 %v283_v61, %v282_v53  ;;  %v290_v6 = vrot.slane %v289_v62, 2  ;;  %v266_v52 = vld [vmem:[#allocation3] sm:$0x3f] }
  0x43   :  { %v278_v7 = vrot.slane %v277_v63, 1  ;;  %v296_v8 = vadd.f32 %v295_v42, %v294_v57  ;;  %v303_v9 = vadd.f32 %v302_v0, %v301_v58  ;;  %v309_v10 = vrot.slane %v308_v1, 4 }
  0x44   :  { %v262_v11 = vsel %vm261_vm14, %v246_v3, %v260_v4  ;;  %v285_v12 = vrot.slane %v284_v5, 1  ;;  %v291_v13 = vadd.f32 %v290_v6, %v289_v62  ;;  %v330_v14 = vmul.f32 %v535_v25, %v535_v25 }
  0x45   :  { %v264_v15 = vadd.f32 %v262_v11, %v197_v2  ;;  %v279_v16 = vadd.f32 %v278_v7, %v277_v63  ;;  %v297_v17 = vrot.slane %v296_v8, 2  ;;  %v304_v18 = vrot.slane %v303_v9, 2 }
  0x46   :  { %v286_v19 = vadd.f32 %v285_v12, %v284_v5  ;;  %v292_v20 = vrot.slane %v291_v13, 1  ;;  %v310_v21 = vadd.f32 %v309_v10, %v308_v1  ;;  %v331_v22 = vmul.f32 %v537_v26, %v537_v26 }
  0x47   :  { %265 = vst [vmem:[#allocation2] sm:$0x3f] %v264_v15  ;;  %v298_v23 = vadd.f32 %v297_v17, %v296_v8  ;;  %v305_v24 = vadd.f32 %v304_v18, %v303_v9  ;;  %v332_v27 = vmul.f32 %v547_v33, %v547_v33  ;;  %v333_v28 = vmul.f32 %v549_v34, %v549_v34 }
  0x48   :  { %v293_v25 = vadd.f32 %v292_v20, %v291_v13  ;;  %v311_v30 = vrot.slane %v310_v21, 2  ;;  %v321_v31 = vsel %vm253_vm7, %v286_v19, %v279_v16  ;;  %v334_v32 = vmul.f32 %v551_v35, %v551_v35 }
  0x49   :  { %v299_v38 = vrot.slane %v298_v23, 1  ;;  %v306_v39 = vrot.slane %v305_v24, 1  ;;  %v335_v26 = vmul.f32 %v555_v37, %v555_v37  ;;  %v336_v40 = vsel %vm204_vm9, %v330_v14, 0.0 }
  0x4a   :  { %v312_v29 = vadd.f32 %v311_v30, %v310_v21  ;;  %v322_v33 = vsel %vm255_vm11, %v293_v25, %v321_v31  ;;  %v337_v41 = vrot.slane %v336_v40, 4  ;;  %v343_v34 = vsel %vm204_vm9, %v331_v22, 0.0 }
  0x4b   :  { %v300_v43 = vadd.f32 %v299_v38, %v298_v23  ;;  %v307_v44 = vadd.f32 %v306_v39, %v305_v24  ;;  %v344_v45 = vrot.slane %v343_v34, 4  ;;  %v350_v46 = vsel %vm204_vm9, %v332_v27, 0.0 }
  0x4c   :  { %v313_v47 = vrot.slane %v312_v29, 1  ;;  %v338_v35 = vadd.f32 %v337_v41, %v336_v40  ;;  %v351_v36 = vrot.slane %v350_v46, 4  ;;  %v357_v48 = vsel %vm204_vm9, %v333_v28, 0.0  ;;  %v329_v28 = vld [vmem:[#allocation4] sm:$0x3f] }
  0x4d   :  { %v323_v37 = vsel %vm257_vm12, %v300_v43, %v322_v33  ;;  %v345_v49 = vadd.f32 %v344_v45, %v343_v34  ;;  %v358_v50 = vrot.slane %v357_v48, 4  ;;  %v364_v51 = vsel %vm204_vm9, %v334_v32, 0.0 }
  0x4e   :  { %v314_v53 = vadd.f32 %v313_v47, %v312_v29  ;;  %v324_v54 = vsel %vm259_vm13, %v307_v44, %v323_v37  ;;  %v339_v55 = vrot.slane %v338_v35, 2  ;;  %v352_v56 = vadd.f32 %v351_v36, %v350_v46  ;;  %v395_v57 = vld [vmem:[#allocation2] sm:$0x3f] }
  0x4f   :  { %v346_v58 = vrot.slane %v345_v49, 2  ;;  %v359_v59 = vadd.f32 %v358_v50, %v357_v48  ;;  %v365_v60 = vrot.slane %v364_v51, 4  ;;  %v371_v61 = vsel %vm204_vm9, %v335_v26, 0.0  ;;  %396 = vst [vmem:[%s734_s2] sm:$0x3f] %v395_v57 }
  0x50   :  { %v325_v62 = vsel %vm261_vm14, %v314_v53, %v324_v54  ;;  %v340_v63 = vadd.f32 %v339_v55, %v338_v35  ;;  %v353_v42 = vrot.slane %v352_v56, 2  ;;  %v372_v0 = vrot.slane %v371_v61, 4 }
  0x51   :  { %v327_v1 = vadd.f32 %v325_v62, %v266_v52  ;;  %v347_v2 = vadd.f32 %v346_v58, %v345_v49  ;;  %v360_v3 = vrot.slane %v359_v59, 2  ;;  %v366_v4 = vadd.f32 %v365_v60, %v364_v51 }
  0x52   :  { %v341_v5 = vrot.slane %v340_v63, 1  ;;  %v354_v6 = vadd.f32 %v353_v42, %v352_v56  ;;  %v373_v7 = vadd.f32 %v372_v0, %v371_v61 }
  0x53   :  { %328 = vst [vmem:[#allocation3] sm:$0x3f] %v327_v1  ;;  %v348_v8 = vrot.slane %v347_v2, 1  ;;  %v361_v9 = vadd.f32 %v360_v3, %v359_v59  ;;  %v367_v10 = vrot.slane %v366_v4, 2 }
  0x54   :  { %v342_v11 = vadd.f32 %v341_v5, %v340_v63  ;;  %v355_v12 = vrot.slane %v354_v6, 1  ;;  %v374_v13 = vrot.slane %v373_v7, 2 }
  0x55   :  { %v349_v14 = vadd.f32 %v348_v8, %v347_v2  ;;  %v362_v15 = vrot.slane %v361_v9, 1  ;;  %v368_v16 = vadd.f32 %v367_v10, %v366_v4 }
  0x56   :  { %v356_v17 = vadd.f32 %v355_v12, %v354_v6  ;;  %v375_v18 = vadd.f32 %v374_v13, %v373_v7 }
  0x57   :  { %v363_v19 = vadd.f32 %v362_v15, %v361_v9  ;;  %v369_v20 = vrot.slane %v368_v16, 1  ;;  %v384_v21 = vsel %vm253_vm7, %v349_v14, %v342_v11 }
  0x58   :  { %v376_v22 = vrot.slane %v375_v18, 1  ;;  %v385_v23 = vsel %vm255_vm11, %v356_v17, %v384_v21 }
  0x59   :  { %v370_v24 = vadd.f32 %v369_v20, %v368_v16  ;;  %v386_v27 = vsel %vm257_vm12, %v363_v19, %v385_v23 }
  0x5a   :  { %v377_v25 = vadd.f32 %v376_v22, %v375_v18  ;;  %v397_v30 = vld [vmem:[#allocation3] sm:$0x3f] }
  0x5b   :  { %v387_v31 = vsel %vm259_vm13, %v370_v24, %v386_v27  ;;  %418 = vst [vmem:[%s734_s2 + $0x8] sm:$0x3f] %v397_v30 }
  0x5c   :  { %v388_v32 = vsel %vm261_vm14, %v377_v25, %v387_v31 }
  0x5d   :  { %v390_v38 = vadd.f32 %v388_v32, %v329_v28 }
  0x5f   :  { %391 = vst [vmem:[#allocation4] sm:$0x3f] %v390_v38 }
  0x66   :  { %v400_v39 = vld [vmem:[#allocation4] sm:$0x3f] }
  0x67   :  { %419 = vst [vmem:[%s734_s2 + $0x10] sm:$0x3f] %v400_v39 }
  0x68   :  { %407 = vsyncpa [#allocation6], 1 }
  0x69   :  { %408 = vsyncpa [#allocation8], 1 }

</bundles_post_ra>
